<compile_context>
chip_gen: v7x
topology: tpu7x:2x2x1
jax: 0.10.0
libtpu: 0.0.40
codegen_flags: <defaults>
</compile_context>

<pallas_src>
import jax
import jax.numpy as jnp
from jax.experimental import pallas as pl
from jax.experimental.pallas import tpu as pltpu


def _compiler_params(semantics, block_bytes):
    # Explicit VMEM budget (perf review, v5e/v7x items): double-buffered
    # in/out blocks plus generous headroom, floored at 16 MiB (never below the
    # v5e scoped default) and clamped to 32 MiB (inside v7x's 64 MiB physical
    # VMEM).  At the toy test shapes this is pure headroom; at realistic dims
    # it makes the budget explicit instead of relying on per-chip defaults.
    limit = int(min(max(4 * block_bytes, 16 << 20), 32 << 20))
    return pltpu.CompilerParams(dimension_semantics=semantics,
                                vmem_limit_bytes=limit)


# --------------------------------------------------------------------------
# Kernel 1: per-batch  att = softmax(q @ q^T);  y = softmax(att @ q)
# --------------------------------------------------------------------------
def _attention_kernel(x_ref, y_ref):
    # Upcast in-kernel (perf review opt 8): callers can pass bf16 activations
    # without a separate XLA convert pass; softmax math stays f32 (v5e has no
    # bf16 VPU/EUP).
    q = x_ref[0].astype(jnp.float32)                               # (C, N)

    # s = q @ q^T : contract the N axis of both operands on the MXU directly.
    # NOTE: at realistic C (>=128) the operands could be cast to bf16 for the
    # MXU; at C=16 the matmuls are latency-bound and f32 is kept (opt 7).
    s = jax.lax.dot_general(q, q, (((1,), (1,)), ((), ())),
                            preferred_element_type=jnp.float32)    # (C, C)
    s = s - jnp.max(s, axis=-1, keepdims=True)
    e = jnp.exp(s)
    # EUP approx reciprocal + multiply (one rcp per row) instead of divides.
    att = e * pl.reciprocal(jnp.sum(e, axis=-1, keepdims=True), approx=True)

    y = jnp.dot(att, q, preferred_element_type=jnp.float32)        # (C, N)
    y = y - jnp.max(y, axis=-1, keepdims=True)
    ey = jnp.exp(y)
    y = ey * pl.reciprocal(jnp.sum(ey, axis=-1, keepdims=True), approx=True)

    y_ref[0] = y.astype(y_ref.dtype)


def _attention_softmax(x3):
    B, C, N = x3.shape
    block_bytes = C * N * (x3.dtype.itemsize + 4)        # in block + f32 out block
    # TODO(synk): when B is large, block Bb batches per grid step with an
    # in-kernel einsum to amortize the ~0.35us per-step overhead (opt 9).
    return pl.pallas_call(
        _attention_kernel,
        out_shape=jax.ShapeDtypeStruct((B, C, N), jnp.float32),
        grid=(B,),
        in_specs=[pl.BlockSpec((1, C, N), lambda b: (b, 0, 0))],
        out_specs=pl.BlockSpec((1, C, N), lambda b: (b, 0, 0)),
        compiler_params=_compiler_params(("parallel",), block_bytes),
    )(x3)


# --------------------------------------------------------------------------
# Kernel 2: per batch, loop over the K class groups:
#   channel-window max -> 3x3/stride1/pad1 spatial max pool -> accumulate,
#   then ONE spatial sum reduction + ONE store per batch.
# --------------------------------------------------------------------------
def _pool_sum_kernel(z_ref, o_ref):
    K, occ, H, W = z_ref.shape                    # block = all groups of one batch

    # Wrap masks, built ONCE per grid step and shared by every class group.
    # pltpu.roll only accepts non-negative shifts; rolling an index iota with
    # the same shift tells us, per position, whether the rolled value came
    # from an adjacent (|delta|==1) source index — i.e. it is a valid 3x3
    # neighbour — independent of the hardware rotate direction.  Requires
    # H > 2 and W > 2 (asserted in the wrapper).
    row = jax.lax.broadcasted_iota(jnp.int32, (H, W), 0)
    col = jax.lax.broadcasted_iota(jnp.int32, (H, W), 1)
    r_fwd = jnp.abs(pltpu.roll(row, shift=1, axis=0) - row) == 1
    r_bwd = jnp.abs(pltpu.roll(row, shift=H - 1, axis=0) - row) == 1
    c_fwd = jnp.abs(pltpu.roll(col, shift=1, axis=1) - col) == 1
    c_bwd = jnp.abs(pltpu.roll(col, shift=W - 1, axis=1) - col) == 1

    acc = jnp.zeros((H, W), jnp.float32)
    # TODO(synk): switch to lax.fori_loop(..., unroll=2) if class_num or H*W
    # grows enough for this static unroll to cause vreg spills (opt 10).
    for k in range(K):                            # static unroll over class groups
        # Max over the channel window (MaxPool2d kernel=(1, occ), stride=(1, occ)):
        # a parallel reduce over the leading block axis (occ-1 elementwise vmax),
        # instead of a serial dependent chain (opt 4).
        m = jnp.max(z_ref[k], axis=0)             # (H, W), strictly positive

        # 3x3 / stride 1 / pad 1 spatial max pool, separable, via XLU rolls.
        # Masked-to-0 wrap entries never win the max because m > 0 everywhere
        # (softmax outputs); do NOT reuse this kernel on data that can be <= 0.
        t = jnp.maximum(
            m,
            jnp.maximum(jnp.where(r_fwd, pltpu.roll(m, shift=1, axis=0), 0.0),
                        jnp.where(r_bwd, pltpu.roll(m, shift=H - 1, axis=0), 0.0)))
        p = jnp.maximum(
            t,
            jnp.maximum(jnp.where(c_fwd, pltpu.roll(t, shift=1, axis=1), 0.0),
                        jnp.where(c_bwd, pltpu.roll(t, shift=W - 1, axis=1), 0.0)))

        # Cheap VPU accumulate; the XLU reduction tree runs once, after the loop.
        acc = acc + p

    total = jnp.sum(jnp.sum(acc, axis=1, keepdims=True), axis=0, keepdims=True)
    o_ref[0] = total                              # one (1,1) store per batch
    # NOTE(opt 5): at large B this per-batch scalar would be better off as an
    # SMEM output; kept as a VMEM (1,1,1) block here for lowering robustness.


def _pool_and_sum(zg, class_num):
    G, occ, H, W = zg.shape                       # G = B * class_num
    B = G // class_num
    block_bytes = class_num * occ * H * W * 4
    return pl.pallas_call(
        _pool_sum_kernel,
        out_shape=jax.ShapeDtypeStruct((B, 1, 1), jnp.float32),
        grid=(B,),
        in_specs=[pl.BlockSpec((class_num, occ, H, W), lambda b: (b, 0, 0, 0))],
        out_specs=pl.BlockSpec((1, 1, 1), lambda b: (b, 0, 0)),
        compiler_params=_compiler_params(("parallel",), block_bytes),
    )(zg)


# --------------------------------------------------------------------------
# Full SFD_Loss forward
# --------------------------------------------------------------------------
def sfd_loss(x, class_num):
    # layout: x is NCHW (B, C, H, W), same as the PyTorch module.
    B, C, H, W = x.shape
    assert C % class_num == 0, "dim must be divisible by class_num"
    assert H > 2 and W > 2, "wrap-mask trick in the pool kernel needs H > 2, W > 2"
    occ = C // class_num                                  # OneClassChannelNum

    x3 = x.reshape(B, C, H * W)                           # native dtype; kernel upcasts
    y = _attention_softmax(x3)                            # (B, C, H*W) f32

    # PyTorch `reshape(B, H, W, C)` on a contiguous tensor = raw row-major
    # reinterpret (free metadata op here), then one XLA copy regroups the
    # channels so each grid step of kernel 2 owns one batch's class windows.
    z = y.reshape(B, H, W, C)
    zt = jnp.transpose(z, (0, 3, 1, 2))                   # (B, C, H, W) — the one glue copy
    zg = zt.reshape(B * class_num, occ, H, W)

    sums = _pool_and_sum(zg, class_num)                   # (B, 1, 1)

    # 1 - mean_{b,k}( sum_{h,w} pooled ) / OneClassChannelNum
    return 1.0 - jnp.sum(sums) / (B * class_num * occ)


# --------------------------------------------------------------------------
# Pure-JAX reference (for verification only)
# --------------------------------------------------------------------------
def sfd_loss_ref(x, class_num):
    B, C, H, W = x.shape
    occ = C // class_num
    br = x.reshape(B, C, H * W).astype(jnp.float32)
    att = jax.nn.softmax(jnp.einsum('bcn,bdn->bcd', br, br), axis=2)
    br2 = jax.nn.softmax(jnp.einsum('bcd,bdn->bcn', att, br), axis=2)
    z = br2.reshape(B, H, W, C)                                      # raw reinterpret
    p1 = jnp.max(z.reshape(B, H, W, class_num, occ), axis=-1)        # (B,H,W,K)
    perm = jnp.transpose(p1, (0, 3, 1, 2))                           # (B,K,H,W)
    pooled = jax.lax.reduce_window(
        perm, -jnp.inf, jax.lax.max,
        window_dimensions=(1, 1, 3, 3), window_strides=(1, 1, 1, 1),
        padding=((0, 0), (0, 0), (1, 1), (1, 1)))
    s = jnp.sum(pooled.reshape(B, class_num, H * W), axis=2)
    return 1.0 - jnp.mean(s) / occ


if __name__ == "__main__":
    key = jax.random.PRNGKey(0)
    # dim = C = 16, class_num = 4 -> OneClassChannelNum = 4.
    # H=8, W=128 keeps every pooled (H, W) tile a native (8,128) vreg so the
    # rolls, masks, accumulator and stores are all unmasked / relayout-free.
    B, C, H, W = 2, 16, 8, 128
    class_num = 4
    x = jax.random.normal(key, (B, C, H, W), dtype=jnp.float32)

    loss = jax.jit(sfd_loss, static_argnums=1)(x, class_num)
    loss = jax.block_until_ready(loss)

    ref = sfd_loss_ref(x, class_num)
    # Tolerance slightly looser than 1e-3 to absorb the EUP approx-reciprocal
    # in the two softmax normalizations.
    assert jnp.allclose(loss, ref, rtol=2e-3, atol=2e-3), (float(loss), float(ref))
    print("KERNEL_OK")
</pallas_src>

<mosaic_0001>
module attributes {stable_mosaic.version = 11 : i64} {
  func.func @_attention_kernel(%arg0: i32, %arg1: memref<1x16x1024xf32, #tpu.memory_space<vmem>>, %arg2: memref<1x16x1024xf32, #tpu.memory_space<vmem>>) attributes {dimension_semantics = [#tpu.dimension_semantics<parallel>], iteration_bounds = array<i64: 2>, scalar_prefetch = 0 : i64, scratch_operands = 0 : i64, tpu.core_type = #tpu.core_type<tc>, window_params = [{transform_indices = @transform_0, window_bounds = array<i64: 1, 16, 1024>}, {transform_indices = @transform_1, window_bounds = array<i64: 1, 16, 1024>}]} {
    %c0 = arith.constant 0 : index
    %c0_0 = arith.constant 0 : index
    %c0_1 = arith.constant 0 : index
    %0 = vector.load %arg1[%c0, %c0_0, %c0_1] : memref<1x16x1024xf32, #tpu.memory_space<vmem>>, vector<1x16x1024xf32>
    %1 = vector.shape_cast %0 : vector<1x16x1024xf32> to vector<16x1024xf32>
    %cst = arith.constant dense<0.000000e+00> : vector<16x16xf32>
    %2 = tpu.matmul %1, %1, %cst {dimension_numbers = #tpu.dot_dimension_numbers<[1], [1], [0], [0], [0, 0, 1, 0], [], []>} : vector<16x1024xf32>, vector<16x1024xf32>, vector<16x16xf32> -> vector<16x16xf32>
    %cst_2 = arith.constant dense<0xFF800000> : vector<16xf32>
    %3 = vector.multi_reduction <maximumf>, %2, %cst_2 [1] : vector<16x16xf32> to vector<16xf32>
    %4 = vector.shape_cast %3 : vector<16xf32> to vector<16x1xf32>
    %5 = vector.broadcast %4 : vector<16x1xf32> to vector<16x16xf32>
    %6 = arith.subf %2, %5 : vector<16x16xf32>
    %7 = math.exp %6 : vector<16x16xf32>
    %cst_3 = arith.constant dense<0.000000e+00> : vector<16xf32>
    %8 = vector.multi_reduction <add>, %7, %cst_3 [1] : vector<16x16xf32> to vector<16xf32>
    %9 = vector.shape_cast %8 : vector<16xf32> to vector<16x1xf32>
    %10 = tpu.reciprocal %9 {approx = true} : vector<16x1xf32> -> vector<16x1xf32>
    %11 = vector.broadcast %10 : vector<16x1xf32> to vector<16x16xf32>
    %12 = arith.mulf %7, %11 : vector<16x16xf32>
    %cst_4 = arith.constant dense<0.000000e+00> : vector<16x1024xf32>
    %13 = tpu.matmul %12, %1, %cst_4 {dimension_numbers = #tpu.dot_dimension_numbers<[1], [0], [0], [1], [0, 0, 1, 1], [], []>} : vector<16x16xf32>, vector<16x1024xf32>, vector<16x1024xf32> -> vector<16x1024xf32>
    %cst_5 = arith.constant dense<0xFF800000> : vector<16xf32>
    %14 = vector.multi_reduction <maximumf>, %13, %cst_5 [1] : vector<16x1024xf32> to vector<16xf32>
    %15 = vector.shape_cast %14 : vector<16xf32> to vector<16x1xf32>
    %16 = vector.broadcast %15 : vector<16x1xf32> to vector<16x1024xf32>
    %17 = arith.subf %13, %16 : vector<16x1024xf32>
    %18 = math.exp %17 : vector<16x1024xf32>
    %cst_6 = arith.constant dense<0.000000e+00> : vector<16xf32>
    %19 = vector.multi_reduction <add>, %18, %cst_6 [1] : vector<16x1024xf32> to vector<16xf32>
    %20 = vector.shape_cast %19 : vector<16xf32> to vector<16x1xf32>
    %21 = tpu.reciprocal %20 {approx = true} : vector<16x1xf32> -> vector<16x1xf32>
    %22 = vector.broadcast %21 : vector<16x1xf32> to vector<16x1024xf32>
    %23 = arith.mulf %18, %22 : vector<16x1024xf32>
    %c0_7 = arith.constant 0 : index
    %c0_8 = arith.constant 0 : index
    %c0_9 = arith.constant 0 : index
    %24 = vector.load %arg2[%c0_7, %c0_8, %c0_9] : memref<1x16x1024xf32, #tpu.memory_space<vmem>>, vector<1x16x1024xf32>
    %25 = vector.shape_cast %24 : vector<1x16x1024xf32> to vector<16x1024xf32>
    %26 = vector.shape_cast %23 : vector<16x1024xf32> to vector<1x16x1024xf32>
    tpu.vector_store %arg2[%c0_7, %c0_8, %c0_9], %26 {strides = array<i32>} : memref<1x16x1024xf32, #tpu.memory_space<vmem>>, vector<1x16x1024xf32>,
    return
  }
  func.func @transform_0(%arg0: i32) -> (i32, i32, i32) {
    %c0_i32 = arith.constant 0 : i32
    %c0_i32_0 = arith.constant 0 : i32
    %c0_i32_1 = arith.constant 0 : i32
    return %arg0, %c0_i32, %c0_i32_0 : i32, i32, i32
  }
  func.func @transform_1(%arg0: i32) -> (i32, i32, i32) {
    %c0_i32 = arith.constant 0 : i32
    %c0_i32_0 = arith.constant 0 : i32
    %c0_i32_1 = arith.constant 0 : i32
    return %arg0, %c0_i32, %c0_i32_0 : i32, i32, i32
  }
}

module attributes {stable_mosaic.version = 11 : i64} {
  func.func @_pool_sum_kernel(%arg0: i32, %arg1: memref<4x4x8x128xf32, #tpu.memory_space<vmem>>, %arg2: memref<1x1x1xf32, #tpu.memory_space<vmem>>) attributes {dimension_semantics = [#tpu.dimension_semantics<parallel>], iteration_bounds = array<i64: 2>, scalar_prefetch = 0 : i64, scratch_operands = 0 : i64, tpu.core_type = #tpu.core_type<tc>, window_params = [{transform_indices = @transform_0, window_bounds = array<i64: 4, 4, 8, 128>}, {transform_indices = @transform_1, window_bounds = array<i64: 1, 1, 1>}]} {
    %0 = tpu.iota {dimensions = array<i32: 0>} : vector<8x128xi32>
    %1 = tpu.iota {dimensions = array<i32: 1>} : vector<8x128xi32>
    %c1_i32 = arith.constant 1 : i32
    %2 = tpu.dynamic_rotate %0 by %c1_i32 dim 0 : vector<8x128xi32>, i32 -> vector<8x128xi32>
    %3 = arith.subi %2, %0 : vector<8x128xi32>
    %4 = math.absi %3 : vector<8x128xi32>
    %c1_i32_0 = arith.constant 1 : i32
    %5 = vector.broadcast %c1_i32_0 : i32 to vector<8x128xi32>
    %6 = arith.cmpi eq, %4, %5 : vector<8x128xi32>
    %c7_i32 = arith.constant 7 : i32
    %7 = tpu.dynamic_rotate %0 by %c7_i32 dim 0 : vector<8x128xi32>, i32 -> vector<8x128xi32>
    %8 = arith.subi %7, %0 : vector<8x128xi32>
    %9 = math.absi %8 : vector<8x128xi32>
    %c1_i32_1 = arith.constant 1 : i32
    %10 = vector.broadcast %c1_i32_1 : i32 to vector<8x128xi32>
    %11 = arith.cmpi eq, %9, %10 : vector<8x128xi32>
    %c1_i32_2 = arith.constant 1 : i32
    %12 = tpu.dynamic_rotate %1 by %c1_i32_2 dim 1 : vector<8x128xi32>, i32 -> vector<8x128xi32>
    %13 = arith.subi %12, %1 : vector<8x128xi32>
    %14 = math.absi %13 : vector<8x128xi32>
    %c1_i32_3 = arith.constant 1 : i32
    %15 = vector.broadcast %c1_i32_3 : i32 to vector<8x128xi32>
    %16 = arith.cmpi eq, %14, %15 : vector<8x128xi32>
    %c127_i32 = arith.constant 127 : i32
    %17 = tpu.dynamic_rotate %1 by %c127_i32 dim 1 : vector<8x128xi32>, i32 -> vector<8x128xi32>
    %18 = arith.subi %17, %1 : vector<8x128xi32>
    %19 = math.absi %18 : vector<8x128xi32>
    %c1_i32_4 = arith.constant 1 : i32
    %20 = vector.broadcast %c1_i32_4 : i32 to vector<8x128xi32>
    %21 = arith.cmpi eq, %19, %20 : vector<8x128xi32>
    %cst = arith.constant 0.000000e+00 : f32
    %22 = vector.broadcast %cst : f32 to vector<8x128xf32>
    %c0 = arith.constant 0 : index
    %c0_5 = arith.constant 0 : index
    %c0_6 = arith.constant 0 : index
    %c0_7 = arith.constant 0 : index
    %23 = vector.load %arg1[%c0, %c0_5, %c0_6, %c0_7] : memref<4x4x8x128xf32, #tpu.memory_space<vmem>>, vector<1x4x8x128xf32>
    %24 = vector.shape_cast %23 : vector<1x4x8x128xf32> to vector<4x8x128xf32>
    %cst_8 = arith.constant dense<0xFF800000> : vector<8x128xf32>
    %25 = vector.multi_reduction <maximumf>, %24, %cst_8 [0] : vector<4x8x128xf32> to vector<8x128xf32>
    %c1_i32_9 = arith.constant 1 : i32
    %26 = tpu.dynamic_rotate %25 by %c1_i32_9 dim 0 : vector<8x128xf32>, i32 -> vector<8x128xf32>
    %cst_10 = arith.constant 0.000000e+00 : f32
    %27 = vector.broadcast %cst_10 : f32 to vector<8x128xf32>
    %28 = arith.select %6, %26, %27 : vector<8x128xi1>, vector<8x128xf32>
    %c7_i32_11 = arith.constant 7 : i32
    %29 = tpu.dynamic_rotate %25 by %c7_i32_11 dim 0 : vector<8x128xf32>, i32 -> vector<8x128xf32>
    %cst_12 = arith.constant 0.000000e+00 : f32
    %30 = vector.broadcast %cst_12 : f32 to vector<8x128xf32>
    %31 = arith.select %11, %29, %30 : vector<8x128xi1>, vector<8x128xf32>
    %32 = arith.maximumf %28, %31 : vector<8x128xf32>
    %33 = arith.maximumf %25, %32 : vector<8x128xf32>
    %c1_i32_13 = arith.constant 1 : i32
    %34 = tpu.dynamic_rotate %33 by %c1_i32_13 dim 1 : vector<8x128xf32>, i32 -> vector<8x128xf32>
    %cst_14 = arith.constant 0.000000e+00 : f32
    %35 = vector.broadcast %cst_14 : f32 to vector<8x128xf32>
    %36 = arith.select %16, %34, %35 : vector<8x128xi1>, vector<8x128xf32>
    %c127_i32_15 = arith.constant 127 : i32
    %37 = tpu.dynamic_rotate %33 by %c127_i32_15 dim 1 : vector<8x128xf32>, i32 -> vector<8x128xf32>
    %cst_16 = arith.constant 0.000000e+00 : f32
    %38 = vector.broadcast %cst_16 : f32 to vector<8x128xf32>
    %39 = arith.select %21, %37, %38 : vector<8x128xi1>, vector<8x128xf32>
    %40 = arith.maximumf %36, %39 : vector<8x128xf32>
    %41 = arith.maximumf %33, %40 : vector<8x128xf32>
    %42 = arith.addf %22, %41 : vector<8x128xf32>
    %c1 = arith.constant 1 : index
    %c0_17 = arith.constant 0 : index
    %c0_18 = arith.constant 0 : index
    %c0_19 = arith.constant 0 : index
    %43 = vector.load %arg1[%c1, %c0_17, %c0_18, %c0_19] : memref<4x4x8x128xf32, #tpu.memory_space<vmem>>, vector<1x4x8x128xf32>
    %44 = vector.shape_cast %43 : vector<1x4x8x128xf32> to vector<4x8x128xf32>
    %cst_20 = arith.constant dense<0xFF800000> : vector<8x128xf32>
    %45 = vector.multi_reduction <maximumf>, %44, %cst_20 [0] : vector<4x8x128xf32> to vector<8x128xf32>
    %c1_i32_21 = arith.constant 1 : i32
    %46 = tpu.dynamic_rotate %45 by %c1_i32_21 dim 0 : vector<8x128xf32>, i32 -> vector<8x128xf32>
    %cst_22 = arith.constant 0.000000e+00 : f32
    %47 = vector.broadcast %cst_22 : f32 to vector<8x128xf32>
    %48 = arith.select %6, %46, %47 : vector<8x128xi1>, vector<8x128xf32>
    %c7_i32_23 = arith.constant 7 : i32
    %49 = tpu.dynamic_rotate %45 by %c7_i32_23 dim 0 : vector<8x128xf32>, i32 -> vector<8x128xf32>
    %cst_24 = arith.constant 0.000000e+00 : f32
    %50 = vector.broadcast %cst_24 : f32 to vector<8x128xf32>
    %51 = arith.select %11, %49, %50 : vector<8x128xi1>, vector<8x128xf32>
    %52 = arith.maximumf %48, %51 : vector<8x128xf32>
    %53 = arith.maximumf %45, %52 : vector<8x128xf32>
    %c1_i32_25 = arith.constant 1 : i32
    %54 = tpu.dynamic_rotate %53 by %c1_i32_25 dim 1 : vector<8x128xf32>, i32 -> vector<8x128xf32>
    %cst_26 = arith.constant 0.000000e+00 : f32
    %55 = vector.broadcast %cst_26 : f32 to vector<8x128xf32>
    %56 = arith.select %16, %54, %55 : vector<8x128xi1>, vector<8x128xf32>
    %c127_i32_27 = arith.constant 127 : i32
    %57 = tpu.dynamic_rotate %53 by %c127_i32_27 dim 1 : vector<8x128xf32>, i32 -> vector<8x128xf32>
    %cst_28 = arith.constant 0.000000e+00 : f32
    %58 = vector.broadcast %cst_28 : f32 to vector<8x128xf32>
    %59 = arith.select %21, %57, %58 : vector<8x128xi1>, vector<8x128xf32>
    %60 = arith.maximumf %56, %59 : vector<8x128xf32>
    %61 = arith.maximumf %53, %60 : vector<8x128xf32>
    %62 = arith.addf %42, %61 : vector<8x128xf32>
    %c2 = arith.constant 2 : index
    %c0_29 = arith.constant 0 : index
    %c0_30 = arith.constant 0 : index
    %c0_31 = arith.constant 0 : index
    %63 = vector.load %arg1[%c2, %c0_29, %c0_30, %c0_31] : memref<4x4x8x128xf32, #tpu.memory_space<vmem>>, vector<1x4x8x128xf32>
    %64 = vector.shape_cast %63 : vector<1x4x8x128xf32> to vector<4x8x128xf32>
    %cst_32 = arith.constant dense<0xFF800000> : vector<8x128xf32>
    %65 = vector.multi_reduction <maximumf>, %64, %cst_32 [0] : vector<4x8x128xf32> to vector<8x128xf32>
    %c1_i32_33 = arith.constant 1 : i32
    %66 = tpu.dynamic_rotate %65 by %c1_i32_33 dim 0 : vector<8x128xf32>, i32 -> vector<8x128xf32>
    %cst_34 = arith.constant 0.000000e+00 : f32
    %67 = vector.broadcast %cst_34 : f32 to vector<8x128xf32>
    %68 = arith.select %6, %66, %67 : vector<8x128xi1>, vector<8x128xf32>
    %c7_i32_35 = arith.constant 7 : i32
    %69 = tpu.dynamic_rotate %65 by %c7_i32_35 dim 0 : vector<8x128xf32>, i32 -> vector<8x128xf32>
    %cst_36 = arith.constant 0.000000e+00 : f32
    %70 = vector.broadcast %cst_36 : f32 to vector<8x128xf32>
    %71 = arith.select %11, %69, %70 : vector<8x128xi1>, vector<8x128xf32>
    %72 = arith.maximumf %68, %71 : vector<8x128xf32>
    %73 = arith.maximumf %65, %72 : vector<8x128xf32>
    %c1_i32_37 = arith.constant 1 : i32
    %74 = tpu.dynamic_rotate %73 by %c1_i32_37 dim 1 : vector<8x128xf32>, i32 -> vector<8x128xf32>
    %cst_38 = arith.constant 0.000000e+00 : f32
    %75 = vector.broadcast %cst_38 : f32 to vector<8x128xf32>
    %76 = arith.select %16, %74, %75 : vector<8x128xi1>, vector<8x128xf32>
    %c127_i32_39 = arith.constant 127 : i32
    %77 = tpu.dynamic_rotate %73 by %c127_i32_39 dim 1 : vector<8x128xf32>, i32 -> vector<8x128xf32>
    %cst_40 = arith.constant 0.000000e+00 : f32
    %78 = vector.broadcast %cst_40 : f32 to vector<8x128xf32>
    %79 = arith.select %21, %77, %78 : vector<8x128xi1>, vector<8x128xf32>
    %80 = arith.maximumf %76, %79 : vector<8x128xf32>
    %81 = arith.maximumf %73, %80 : vector<8x128xf32>
    %82 = arith.addf %62, %81 : vector<8x128xf32>
    %c3 = arith.constant 3 : index
    %c0_41 = arith.constant 0 : index
    %c0_42 = arith.constant 0 : index
    %c0_43 = arith.constant 0 : index
    %83 = vector.load %arg1[%c3, %c0_41, %c0_42, %c0_43] : memref<4x4x8x128xf32, #tpu.memory_space<vmem>>, vector<1x4x8x128xf32>
    %84 = vector.shape_cast %83 : vector<1x4x8x128xf32> to vector<4x8x128xf32>
    %cst_44 = arith.constant dense<0xFF800000> : vector<8x128xf32>
    %85 = vector.multi_reduction <maximumf>, %84, %cst_44 [0] : vector<4x8x128xf32> to vector<8x128xf32>
    %c1_i32_45 = arith.constant 1 : i32
    %86 = tpu.dynamic_rotate %85 by %c1_i32_45 dim 0 : vector<8x128xf32>, i32 -> vector<8x128xf32>
    %cst_46 = arith.constant 0.000000e+00 : f32
    %87 = vector.broadcast %cst_46 : f32 to vector<8x128xf32>
    %88 = arith.select %6, %86, %87 : vector<8x128xi1>, vector<8x128xf32>
    %c7_i32_47 = arith.constant 7 : i32
    %89 = tpu.dynamic_rotate %85 by %c7_i32_47 dim 0 : vector<8x128xf32>, i32 -> vector<8x128xf32>
    %cst_48 = arith.constant 0.000000e+00 : f32
    %90 = vector.broadcast %cst_48 : f32 to vector<8x128xf32>
    %91 = arith.select %11, %89, %90 : vector<8x128xi1>, vector<8x128xf32>
    %92 = arith.maximumf %88, %91 : vector<8x128xf32>
    %93 = arith.maximumf %85, %92 : vector<8x128xf32>
    %c1_i32_49 = arith.constant 1 : i32
    %94 = tpu.dynamic_rotate %93 by %c1_i32_49 dim 1 : vector<8x128xf32>, i32 -> vector<8x128xf32>
    %cst_50 = arith.constant 0.000000e+00 : f32
    %95 = vector.broadcast %cst_50 : f32 to vector<8x128xf32>
    %96 = arith.select %16, %94, %95 : vector<8x128xi1>, vector<8x128xf32>
    %c127_i32_51 = arith.constant 127 : i32
    %97 = tpu.dynamic_rotate %93 by %c127_i32_51 dim 1 : vector<8x128xf32>, i32 -> vector<8x128xf32>
    %cst_52 = arith.constant 0.000000e+00 : f32
    %98 = vector.broadcast %cst_52 : f32 to vector<8x128xf32>
    %99 = arith.select %21, %97, %98 : vector<8x128xi1>, vector<8x128xf32>
    %100 = arith.maximumf %96, %99 : vector<8x128xf32>
    %101 = arith.maximumf %93, %100 : vector<8x128xf32>
    %102 = arith.addf %82, %101 : vector<8x128xf32>
    %cst_53 = arith.constant dense<0.000000e+00> : vector<8xf32>
    %103 = vector.multi_reduction <add>, %102, %cst_53 [1] : vector<8x128xf32> to vector<8xf32>
    %104 = vector.shape_cast %103 : vector<8xf32> to vector<8x1xf32>
    %cst_54 = arith.constant dense<0.000000e+00> : vector<1xf32>
    %105 = vector.multi_reduction <add>, %104, %cst_54 [0] : vector<8x1xf32> to vector<1xf32>
    %106 = vector.shape_cast %105 : vector<1xf32> to vector<1x1xf32>
    %c0_55 = arith.constant 0 : index
    %c0_56 = arith.constant 0 : index
    %c0_57 = arith.constant 0 : index
    %107 = vector.load %arg2[%c0_55, %c0_56, %c0_57] : memref<1x1x1xf32, #tpu.memory_space<vmem>>, vector<1x1x1xf32>
    %108 = vector.shape_cast %107 : vector<1x1x1xf32> to vector<1x1xf32>
    %109 = vector.shape_cast %106 : vector<1x1xf32> to vector<1x1x1xf32>
    tpu.vector_store %arg2[%c0_55, %c0_56, %c0_57], %109 {strides = array<i32>} : memref<1x1x1xf32, #tpu.memory_space<vmem>>, vector<1x1x1xf32>,
    return
  }
  func.func @transform_0(%arg0: i32) -> (i32, i32, i32, i32) {
    %c0_i32 = arith.constant 0 : i32
    %c0_i32_0 = arith.constant 0 : i32
    %c0_i32_1 = arith.constant 0 : i32
    %c0_i32_2 = arith.constant 0 : i32
    return %arg0, %c0_i32, %c0_i32_0, %c0_i32_1 : i32, i32, i32, i32
  }
  func.func @transform_1(%arg0: i32) -> (i32, i32, i32) {
    %c0_i32 = arith.constant 0 : i32
    %c0_i32_0 = arith.constant 0 : i32
    %c0_i32_1 = arith.constant 0 : i32
    return %arg0, %c0_i32, %c0_i32_0 : i32, i32, i32
  }
}

</mosaic_0001>

<bundles_post_ra>
// kernel: sfd_loss.3
= control target key start
LH: loop header
LB: loop body
LE: loop exit
PB: predicated region body
PF: predicated region fallthrough
CT: control target
= control target key end

     0   :  { %s353_s6 = smov 0   ;;  %s425_s0 = inlined_call_operand.vmem [shape: f32[8,4,8,128], index: 0, kind: input, shape index: {}]   ;;  %s426_s1 = inlined_call_operand.vmem [shape: f32[2,1,1], index: 1, kind: output, shape index: {}]  }
   0x1 LB: > { %s359_s7 = sadd.s32 4294967295, %s339_s6   ;;  %p300_p0 = scmp.ge.s32.totalorder %s339_s6, 1  ;;  %s339_s6 = sphi %s353_s6, %s11_s6  }
   0x2   : > { %p89_p1 = scmp.lt.s32.totalorder %s339_s6, 3 }
   0x4   : > { %p90_p2 = pnand %p300_p0, %p89_p1 }
   0x5   : > { %v118_v0 = vlaneseq (!%p90_p2)  ;;  %s301_s8 = sshll.u32 (!%p90_p2), %s359_s7, 2  ;;  %s341_s9 = smov (!%p90_p2), 1   ;;  %vm247_vm4 = vcmask (!%p90_p2), 0  }
   0x6   : > { %93 = sbr.rel (%p90_p2) target bundleno = 323 (0x143), region = 24  ;;  %p109_p3 = scmp.lt.s32.totalorder (!%p90_p2), %s301_s8, 7 }
   0x7   : > { %v364_v1 = vand.u32 (!%p90_p2), 127, %v118_v0  ;;  %v119_v2 = vshrl.u32 (!%p90_p2), %v118_v0, 7  ;;  %s342_s14 = smov (!%p90_p2), 127   ;;  %p115_p4 = scmp.lt.s32.totalorder (!%p90_p2), %s359_s7, 1 }
   0x9   : > { %134 = vrot.lane.b32.xlu0 (!%p90_p2), %v364_v1, %s341_s9  ;;  %v122_v3 = vrot.slane (!%p90_p2), %v119_v2, 7  ;;  %v128_v4 = vrot.slane (!%p90_p2), %v119_v2, 1 }
   0xb   : > { %v123_v5 = vsub.s32 (!%p90_p2), %v122_v3, %v119_v2  ;;  %v129_v6 = vsub.s32 (!%p90_p2), %v128_v4, %v119_v2 }
   0xd   : > { %s428_s8 = smov (!%p109_p3, %s301_s8), 7  ;;  %141 = vrot.lane.b32.xlu0 %v364_v1, %s342_s14  ;;  %v125_v7 = vsub.s32 0, %v123_v5  ;;  %v131_v8 = vsub.s32 0, %v129_v6  ;;  %s430_s7 = smov (!%p115_p4, %s359_s7), 1 }
   0xe   : > { %s322_s10 = sshll.u32 %s428_s8, 5  ;;  %s117_s17 = scalar_lea.vmem %s426_s1, %s430_s7 }
   0xf   : > { %s371_s13 = scalar_lea.vmem %s425_s0, %s322_s10  ;;  %v304_v16 = vmin.u32 %v125_v7, %v123_v5  ;;  %v305_v17 = vmin.u32 %v131_v8, %v129_v6 }
  0x10   : > { %v308_v9 = vld [vmem:[%s371_s13 + $0x20] sm:$0xff]  ;;  %v309_v10 = vld [vmem:[%s371_s13 + $0x28] sm:$0xff]  ;;  %v310_v11 = vld [vmem:[%s371_s13 + $0x30] sm:$0xff] }
  0x11   : > { %v311_v12 = vld [vmem:[%s371_s13 + $0x38] sm:$0xff]  ;;  %v175_v13 = vmax.f32 %v308_v9, %v309_v10  ;;  %v148_v14 = vld [vmem:[%s371_s13] sm:$0xff]  ;;  %v149_v15 = vld [vmem:[%s371_s13 + $0x8] sm:$0xff]  ;;  %vm127_vm0 = vcmp.eq.s32.totalorder %v304_v16, 1  ;;  %vm133_vm1 = vcmp.eq.s32.totalorder %v305_v17, 1 }
  0x12   : > { %v176_v18 = vmax.f32 %v310_v11, %v311_v12  ;;  %v150_v19 = vld [vmem:[%s371_s13 + $0x10] sm:$0xff]  ;;  %v151_v20 = vld [vmem:[%s371_s13 + $0x18] sm:$0xff]  ;;  %v152_v21 = vmax.f32 %v148_v14, %v149_v15  ;;  %v312_v22 = vld [vmem:[%s371_s13 + $0x40] sm:$0xff] }
  0x13   : > { %v153_v23 = vmax.f32 %v150_v19, %v151_v20  ;;  %v313_v24 = vld [vmem:[%s371_s13 + $0x48] sm:$0xff]  ;;  %v314_v25 = vld [vmem:[%s371_s13 + $0x50] sm:$0xff]  ;;  %v315_v26 = vld [vmem:[%s371_s13 + $0x58] sm:$0xff] }
  0x14   : > { %v177_v27 = vmax.f32 %v175_v13, %v176_v18  ;;  %v198_v28 = vmax.f32 %v312_v22, %v313_v24  ;;  %v316_v29 = vld [vmem:[%s371_s13 + $0x60] sm:$0xff]  ;;  %v317_v30 = vld [vmem:[%s371_s13 + $0x68] sm:$0xff]  ;;  %v318_v31 = vld [vmem:[%s371_s13 + $0x70] sm:$0xff]  ;;  %v199_v33 = vmax.f32 %v314_v25, %v315_v26 }
  0x15   : > { %v154_v32 = vmax.f32 %v152_v21, %v153_v23  ;;  %v319_v34 = vld [vmem:[%s371_s13 + $0x78] sm:$0xff]  ;;  %v221_v35 = vmax.f32 %v316_v29, %v317_v30 }
  0x16   : > { %v178_v36 = vrot.slane %v177_v27, 7  ;;  %v180_v37 = vrot.slane %v177_v27, 1  ;;  %v222_v38 = vmax.f32 %v318_v31, %v319_v34  ;;  %v200_v41 = vmax.f32 %v198_v28, %v199_v33 }
  0x17   : > { %v155_v39 = vrot.slane %v154_v32, 7  ;;  %v157_v40 = vrot.slane %v154_v32, 1 }
  0x18   : > { %v179_v42 = vsel %vm127_vm0, %v178_v36, 0.0  ;;  %v181_v43 = vsel %vm133_vm1, %v180_v37, 0.0  ;;  %v223_v44 = vmax.f32 %v221_v35, %v222_v38  ;;  %v201_v48 = vrot.slane %v200_v41, 7 }
  0x19   : > { %v182_v45 = vmax.f32 %v179_v42, %v181_v43  ;;  %v156_v46 = vsel %vm127_vm0, %v155_v39, 0.0  ;;  %v158_v47 = vsel %vm133_vm1, %v157_v40, 0.0  ;;  %v203_v50 = vrot.slane %v200_v41, 1 }
  0x1a   : > { %v159_v49 = vmax.f32 %v156_v46, %v158_v47  ;;  %v224_v51 = vrot.slane %v223_v44, 7  ;;  %v226_v52 = vrot.slane %v223_v44, 1  ;;  %v202_v54 = vsel %vm127_vm0, %v201_v48, 0.0 }
  0x1b   : > { %v183_v53 = vmax.f32 %v177_v27, %v182_v45  ;;  %v204_v56 = vsel %vm133_vm1, %v203_v50, 0.0 }
  0x1c   : > { %v160_v55 = vmax.f32 %v154_v32, %v159_v49  ;;  %v225_v57 = vsel %vm127_vm0, %v224_v51, 0.0  ;;  %v227_v58 = vsel %vm133_vm1, %v226_v52, 0.0  ;;  %v205_v59 = vmax.f32 %v202_v54, %v204_v56 }
  0x1d   : > { %184 = vrot.lane.b32.xlu0 %v183_v53, %s341_s9  ;;  %v228_v60 = vmax.f32 %v225_v57, %v227_v58 }
  0x1e   : > { %161 = vrot.lane.b32.xlu1 %v160_v55, %s341_s9  ;;  %v206_v61 = vmax.f32 %v200_v41, %v205_v59 }
  0x1f   : > { %v229_v62 = vmax.f32 %v223_v44, %v228_v60 }
  0x21   : > { %207 = vrot.lane.b32.xlu0 %v206_v61, %s341_s9 }
  0x22   : > { %164 = vrot.lane.b32.xlu1 %v160_v55, %s342_s14 }
  0x25   : > { %230 = vrot.lane.b32.xlu0 %v229_v62, %s341_s9 }
  0x26   : > { %187 = vrot.lane.b32.xlu1 %v183_v53, %s342_s14 }
  0x2a   : > { %210 = vrot.lane.b32.xlu1 %v206_v61, %s342_s14 }
  0x2e   : > { %233 = vrot.lane.b32.xlu1 %v229_v62, %s342_s14 }
  0x7b   : > { %v135_v63 = vpop.permute.xlu0 %134 }
  0x7c   : > { %v136_v3 = vsub.s32 %v135_v63, %v364_v1 }
  0x7e   : > { %v138_v5 = vsub.s32 0, %v136_v3 }
  0x7f   : > { %v142_v0 = vpop.permute.xlu0 %141 }
  0x80   : > { %v143_v2 = vsub.s32 %v142_v0, %v364_v1  ;;  %v306_v9 = vmin.u32 %v138_v5, %v136_v3 }
  0x82   : > { %v145_v4 = vsub.s32 0, %v143_v2  ;;  %vm140_vm3 = vcmp.eq.s32.totalorder %v306_v9, 1 }
  0x84   : > { %v307_v7 = vmin.u32 %v145_v4, %v143_v2 }
  0x86   : > { %vm147_vm2 = vcmp.eq.s32.totalorder %v307_v7, 1 }
  0x8f   : > { %v185_v8 = vpop.permute.xlu0 %184 }
  0x90   : > { %v162_v6 = vpop.permute.xlu1 %161  ;;  %v186_v13 = vsel %vm140_vm3, %v185_v8, 0.0 }
  0x91   : > { %v163_v1 = vsel %vm140_vm3, %v162_v6, 0.0 }
  0x93   : > { %v208_v11 = vpop.permute.xlu0 %207 }
  0x94   : > { %v165_v10 = vpop.permute.xlu1 %164  ;;  %v209_v19 = vsel %vm140_vm3, %v208_v11, 0.0 }
  0x95   : > { %v166_v14 = vsel %vm147_vm2, %v165_v10, 0.0 }
  0x96   : > { %v167_v17 = vmax.f32 %v163_v1, %v166_v14 }
  0x97   : > { %v231_v21 = vpop.permute.xlu0 %230 }
  0x98   : > { %v188_v12 = vpop.permute.xlu1 %187  ;;  %v168_v24 = vmax.f32 %v160_v55, %v167_v17  ;;  %v232_v27 = vsel %vm140_vm3, %v231_v21, 0.0 }
  0x99   : > { %v189_v15 = vsel %vm147_vm2, %v188_v12, 0.0 }
  0x9a   : > { %v190_v16 = vmax.f32 %v186_v13, %v189_v15 }
  0x9c   : > { %v211_v18 = vpop.permute.xlu1 %210  ;;  %v191_v22 = vmax.f32 %v183_v53, %v190_v16 }
  0x9d   : > { %v212_v20 = vsel %vm147_vm2, %v211_v18, 0.0 }
  0x9e   : > { %v213_v23 = vmax.f32 %v209_v19, %v212_v20  ;;  %v192_v30 = vadd.f32 %v191_v22, %v168_v24 }
  0xa0   : > { %v214_v25 = vmax.f32 %v206_v61, %v213_v23  ;;  %v234_v26 = vpop.permute.xlu1 %233 }
  0xa1   : > { %v235_v28 = vsel %vm147_vm2, %v234_v26, 0.0 }
  0xa2   : > { %v236_v29 = vmax.f32 %v232_v27, %v235_v28  ;;  %v215_v31 = vadd.f32 %v214_v25, %v192_v30 }
  0xa4   : > { %v237_v32 = vmax.f32 %v229_v62, %v236_v29 }
  0xa6   : > { %v238_v33 = vadd.f32 %v237_v32, %v215_v31 }
  0xa8   : > { %239 = vadd.xlane.f32.xlu0 %v238_v33 }
 0x135   : > { %v240_v34 = vpop.xlane.xlu0 %239 }
 0x136   : > { %v241_v35 = vrot.slane %v240_v34, 4 }
 0x138   : > { %v242_v36 = vadd.f32 %v241_v35, %v240_v34 }
 0x13a   : > { %v243_v37 = vrot.slane %v242_v36, 2 }
 0x13c   : > { %v244_v38 = vadd.f32 %v243_v37, %v242_v36 }
 0x13e   : > { %v245_v39 = vrot.slane %v244_v38, 1 }
 0x140   : > { %v246_v40 = vadd.f32 %v245_v39, %v244_v38 }
 0x142   : > { %248 = vst.msk [vmem:[%s117_s17] sm:$0x1] %vm247_vm4, %v246_v40 }
 0x143 PF: > { %s11_s6 = sadd.s32 1, %s339_s6  }
 0x144   : > { %p8_p5 = scmp.ge.s32.totalorder %s11_s6, 4  }
 0x146   :  { %10 = sbr.rel (!%p8_p5) target bundleno = 1 (0x1), region = 57 }

// kernel: sfd_loss.2
= control target key start
LH: loop header
LB: loop body
LE: loop exit
PB: predicated region body
PF: predicated region fallthrough
CT: control target
= control target key end

     0   :  { %s1080_s6 = smov 0   ;;  %s1160_s0 = inlined_call_operand.vmem [shape: f32[2,16,1024], index: 0, kind: input, shape index: {}]   ;;  %s1161_s1 = inlined_call_operand.vmem [shape: f32[2,16,1024], index: 1, kind: output, shape index: {}]  }
   0x1 LB: > { %s943_s7 = sadd.s32 4294967295, %s1067_s6   ;;  %p947_p0 = scmp.ge.s32.totalorder %s1067_s6, 1  ;;  %s1067_s6 = sphi %s1080_s6, %s11_s6  }
   0x2   : > { %p87_p1 = scmp.lt.s32.totalorder %s1067_s6, 3 }
   0x4   : > { %p88_p2 = pnand %p947_p0, %p87_p1 }
   0x5   : > { %p107_p3 = scmp.lt.s32.totalorder (!%p88_p2), %s943_s7, 1  ;;  %vm433_vm0 = vcmask (!%p88_p2), 130048   ;;  %v1069_v40 = vmov (!%p88_p2), 0.0  }
   0x6   : > { %91 = sbr.rel (%p88_p2) target bundleno = 1155 (0x483), region = 24  ;;  %526 = vmatprep.mubr.f32.mxu1 (!%p88_p2), %v1069_v40 }
   0xd   : > { %s1163_s7 = smov (!%p107_p3, %s943_s7), 1 }
   0xe   : > { %s962_s8 = sshll.u32 %s1163_s7, 7 }
   0xf   : > { %s1096_s11 = scalar_lea.vmem %s1160_s0, %s962_s8  ;;  %s1139_s14 = scalar_lea.vmem %s1161_s1, %s962_s8 }
  0x10   : > { %v118_v0 = vld [vmem:[%s1096_s11 + $0x8] sm:$0xff]  ;;  %v117_v2 = vld [vmem:[%s1096_s11] sm:$0xff]  ;;  %v120_v5 = vld [vmem:[%s1096_s11 + $0x18] sm:$0xff] }
  0x11   : > { %v126_v1 = vld [vmem:[%s1096_s11 + $0x48] sm:$0xff]  ;;  %v125_v4 = vld [vmem:[%s1096_s11 + $0x40] sm:$0xff]  ;;  %197 = vmatprep.mubr.f32.mxu0 %v118_v0  ;;  %v128_v6 = vld [vmem:[%s1096_s11 + $0x58] sm:$0xff] }
  0x12   : > { %v964_v3 = vpack.c.bf16 %v126_v1, %v118_v0  ;;  %v966_v7 = vpack.c.bf16 %v125_v4, %v117_v2  ;;  %v968_v8 = vpack.c.bf16 %v128_v6, %v120_v5  ;;  %v119_v9 = vld [vmem:[%s1096_s11 + $0x10] sm:$0xff]  ;;  %v122_v11 = vld [vmem:[%s1096_s11 + $0x28] sm:$0xff]  ;;  %v121_v15 = vld [vmem:[%s1096_s11 + $0x20] sm:$0xff] }
  0x13   : > { %v127_v10 = vld [vmem:[%s1096_s11 + $0x50] sm:$0xff]  ;;  %v130_v12 = vld [vmem:[%s1096_s11 + $0x68] sm:$0xff]  ;;  %v129_v16 = vld [vmem:[%s1096_s11 + $0x60] sm:$0xff] }
  0x14   : > { %965 = vmatprep.subr.bf16.mxu0 %v964_v3  ;;  %981 = vmatprep.subr.bf16.mxu1 %v964_v3  ;;  %v1108_v13 = vpack.c.bf16 %v127_v10, %v119_v9  ;;  %v1110_v14 = vpack.c.bf16 %v130_v12, %v122_v11  ;;  %v124_v17 = vld [vmem:[%s1096_s11 + $0x38] sm:$0xff]  ;;  %v974_v19 = vpack.c.bf16 %v129_v16, %v121_v15  ;;  %v123_v21 = vld [vmem:[%s1096_s11 + $0x30] sm:$0xff] }
  0x15   : > { %967 = vmatpush1.bf16.xpose.msra.mxu0 %v966_v7  ;;  %983 = vmatpush1.bf16.msra.mxu1 %v966_v7  ;;  %v132_v18 = vld [vmem:[%s1096_s11 + $0x78] sm:$0xff]  ;;  %v131_v22 = vld [vmem:[%s1096_s11 + $0x70] sm:$0xff] }
  0x16   : > { %969 = vmatprep.subr.bf16.mxu0 %v968_v8  ;;  %985 = vmatprep.subr.bf16.mxu1 %v968_v8  ;;  %v976_v20 = vpack.c.bf16 %v132_v18, %v124_v17  ;;  %v978_v23 = vpack.c.bf16 %v131_v22, %v123_v21 }
  0x1c   : > { %198 = vmatmul.mubr.f32.vlgmr.msra.gmra.mrb[0].mxu0 %v117_v2 }
  0x1d   : > { %971 = vmatpush1.bf16.xpose.msra.mxu0 %v1108_v13  ;;  %202 = vmatprep.mubr.f32.mxu0 %v126_v1 }
  0x1e   : > { %973 = vmatprep.subr.bf16.mxu0 %v1110_v14 }
  0x20   : > { %203 = vmatmul.mubr.f32.gmra.mrb[2].mxu0 %v125_v4 }
  0x21   : > { %272 = vmatprep.mubr.f32.mxu0 %v120_v5 }
  0x24   : > { %273 = vmatmul.mubr.f32.vlgmr.msra.gmra.mrb[0].mxu0 %v119_v9 }
  0x25   : > { %975 = vmatpush1.bf16.xpose.msra.mxu0 %v974_v19  ;;  %277 = vmatprep.mubr.f32.mxu0 %v128_v6 }
  0x26   : > { %977 = vmatprep.subr.bf16.mxu0 %v976_v20 }
  0x28   : > { %278 = vmatmul.mubr.f32.gmra.mrb[2].mxu0 %v127_v10 }
  0x29   : > { %347 = vmatprep.mubr.f32.mxu0 %v122_v11 }
  0x2c   : > { %348 = vmatmul.mubr.f32.vlgmr.msra.gmra.mrb[0].mxu0 %v121_v15 }
  0x2d   : > { %979 = vmatpush1.bf16.xpose.msra.mxu0 %v978_v23  ;;  %352 = vmatprep.mubr.f32.mxu0 %v130_v12 }
  0x30   : > { %353 = vmatmul.mubr.f32.gmra.mrb[2].mxu0 %v129_v16 }
  0x31   : > { %422 = vmatprep.mubr.f32.mxu0 %v124_v17 }
  0x34   : > { %423 = vmatmul.mubr.f32.vlgmr.msra.gmra.mrb[0].mxu0 %v123_v21 }
  0x35   : > { %427 = vmatprep.mubr.f32.mxu0 %v132_v18 }
  0x38   : > { %428 = vmatmul.mubr.f32.gmra.mrb[2].mxu0 %v131_v22 }
 0x107   : > { %v424_v24 = vpop.f32.mrb[0].mxu0 }
 0x108   : > { %v426_v25 = vpop.f32.mrb[1].mxu0  ;;  %v434_v26 = vsel %vm433_vm0, %v424_v24, -inf }
 0x109   : > { %435 = vmax.xlane.f32.xlu0 %v434_v26 }
 0x10b   : > { %v429_v27 = vpop.f32.mrb[2].mxu0 }
 0x10c   : > { %v431_v28 = vpop.f32.mrb[3].mxu0  ;;  %v437_v29 = vsel %vm433_vm0, %v429_v27, -inf }
 0x10d   : > { %438 = vmax.xlane.f32.xlu0 %v437_v29 }
 0x196   : > { %v436_v30 = vpop.xlane.xlu0 %435 }
 0x197   : > { %v440_v31 = vsub.f32 %v424_v24, %v436_v30 }
 0x199   : > { %v442_v32 = vmul.f32 1.442695, %v440_v31 }
 0x19a   : > { %v439_v33 = vpop.xlane.xlu0 %438 }
 0x19b   : > { %1017 = vpow2.f32 %v442_v32  ;;  %v441_v34 = vsub.f32 %v429_v27, %v439_v33 }
 0x19d   : > { %v444_v35 = vmul.f32 1.442695, %v441_v34 }
 0x19f   : > { %1019 = vpow2.f32 %v444_v35 }
 0x1a5   : > { %v1018_v36 = vpop.eup %1017 }
 0x1a6   : > { %v446_v37 = vsel %vm433_vm0, %v1018_v36, 0.0 }
 0x1a7   : > { %447 = vadd.xlane.f32.xlu1 %v446_v37 }
 0x1a9   : > { %v1020_v38 = vpop.eup %1019 }
 0x1aa   : > { %v449_v39 = vsel %vm433_vm0, %v1020_v38, 0.0 }
 0x1ab   : > { %450 = vadd.xlane.f32.xlu1 %v449_v39 }
 0x234   : > { %v448_v41 = vpop.xlane.xlu1 %447 }
 0x235   : > { %1021 = vrcp.f32 %v448_v41 }
 0x238   : > { %v451_v42 = vpop.xlane.xlu1 %450 }
 0x239   : > { %1023 = vrcp.f32 %v451_v42 }
 0x23f   : > { %v1022_v43 = vpop.eup %1021 }
 0x240   : > { %v454_v44 = vmul.f32 %v1022_v43, %v1018_v36 }
 0x242   : > { %952 = vmatmul.mubr.msk.f32.vlgmr.msra.gmra.mrb[0].mxu1 %vm433_vm0, %v454_v44 }
 0x243   : > { %v1024_v45 = vpop.eup %1023  ;;  %987 = vmatpush1.bf16.msra.mxu1 %v1108_v13  ;;  %532 = vmatprep.mubr.f32.mxu1 %v1069_v40 }
 0x244   : > { %v455_v46 = vmul.f32 %v1024_v45, %v1020_v38  ;;  %989 = vmatprep.subr.bf16.mxu1 %v1110_v14 }
 0x246   : > { %953 = vmatmul.mubr.msk.f32.gmra.mrb[2].mxu1 %vm433_vm0, %v455_v46 }
 0x247   : > { %603 = vmatprep.mubr.f32.mxu1 %v1069_v40 }
 0x24a   : > { %954 = vmatmul.mubr.msk.f32.vlgmr.msra.gmra.mrb[4].mxu1 %vm433_vm0, %v454_v44 }
 0x24b   : > { %991 = vmatpush1.bf16.msra.mxu1 %v974_v19  ;;  %609 = vmatprep.mubr.f32.mxu1 %v1069_v40 }
 0x24c   : > { %993 = vmatprep.subr.bf16.mxu1 %v976_v20 }
 0x24e   : > { %955 = vmatmul.mubr.msk.f32.gmra.mrb[6].mxu1 %vm433_vm0, %v455_v46 }
 0x24f   : > { %680 = vmatprep.mubr.f32.mxu1 %v1069_v40 }
 0x252   : > { %956 = vmatmul.mubr.msk.f32.vlgmr.msra.gmra.mrb[8].mxu1 %vm433_vm0, %v454_v44 }
 0x253   : > { %995 = vmatpush1.bf16.msra.mxu1 %v978_v23  ;;  %686 = vmatprep.mubr.f32.mxu1 %v1069_v40 }
 0x256   : > { %957 = vmatmul.mubr.msk.f32.gmra.mrb[10].mxu1 %vm433_vm0, %v455_v46 }
 0x257   : > { %757 = vmatprep.mubr.f32.mxu1 %v1069_v40 }
 0x25a   : > { %958 = vmatmul.mubr.msk.f32.vlgmr.msra.gmra.mrb[12].mxu1 %vm433_vm0, %v454_v44 }
 0x25b   : > { %763 = vmatprep.mubr.f32.mxu1 %v1069_v40 }
 0x25e   : > { %959 = vmatmul.mubr.msk.f32.gmra.mrb[14].mxu1 %vm433_vm0, %v455_v46 }
 0x315   : > { %v528_v47 = vpop.f32.mrb[0].mxu1 }
 0x316   : > { %v530_v48 = vpop.f32.mrb[1].mxu1 }
 0x319   : > { %v534_v49 = vpop.f32.mrb[2].mxu1 }
 0x31a   : > { %v536_v50 = vpop.f32.mrb[3].mxu1 }
 0x31d   : > { %v605_v51 = vpop.f32.mrb[4].mxu1 }
 0x31e   : > { %v770_v52 = vmax.f32 %v528_v47, %v605_v51  ;;  %v607_v53 = vpop.f32.mrb[5].mxu1 }
 0x31f   : > { %v771_v54 = vmax.f32 %v530_v48, %v607_v53 }
 0x321   : > { %v611_v55 = vpop.f32.mrb[6].mxu1 }
 0x322   : > { %v779_v56 = vmax.f32 %v534_v49, %v611_v55  ;;  %v613_v57 = vpop.f32.mrb[7].mxu1 }
 0x323   : > { %v780_v58 = vmax.f32 %v536_v50, %v613_v57 }
 0x325   : > { %v682_v59 = vpop.f32.mrb[8].mxu1 }
 0x326   : > { %v772_v60 = vmax.f32 %v770_v52, %v682_v59  ;;  %v684_v61 = vpop.f32.mrb[9].mxu1 }
 0x327   : > { %v773_v62 = vmax.f32 %v771_v54, %v684_v61 }
 0x329   : > { %v688_v63 = vpop.f32.mrb[10].mxu1 }
 0x32a   : > { %v781_v0 = vmax.f32 %v779_v56, %v688_v63  ;;  %v690_v1 = vpop.f32.mrb[11].mxu1 }
 0x32b   : > { %v782_v2 = vmax.f32 %v780_v58, %v690_v1 }
 0x32d   : > { %v759_v3 = vpop.f32.mrb[12].mxu1 }
 0x32e   : > { %v774_v4 = vmax.f32 %v772_v60, %v759_v3  ;;  %v761_v5 = vpop.f32.mrb[13].mxu1 }
 0x32f   : > { %v775_v6 = vmax.f32 %v773_v62, %v761_v5 }
 0x331   : > { %v765_v7 = vpop.f32.mrb[14].mxu1  ;;  %v776_v8 = vmax.f32 %v774_v4, %v775_v6 }
 0x332   : > { %v783_v9 = vmax.f32 %v781_v0, %v765_v7  ;;  %v767_v10 = vpop.f32.mrb[15].mxu1 }
 0x333   : > { %v784_v11 = vmax.f32 %v782_v2, %v767_v10  ;;  %777 = vmax.xlane.f32.xlu0 %v776_v8 }
 0x335   : > { %v785_v12 = vmax.f32 %v783_v9, %v784_v11 }
 0x337   : > { %786 = vmax.xlane.f32.xlu1 %v785_v12 }
 0x3c0   : > { %v778_v13 = vpop.xlane.xlu0 %777 }
 0x3c1   : > { %v788_v14 = vsub.f32 %v528_v47, %v778_v13  ;;  %v789_v15 = vsub.f32 %v530_v48, %v778_v13  ;;  %v790_v16 = vsub.f32 %v605_v51, %v778_v13  ;;  %v791_v17 = vsub.f32 %v607_v53, %v778_v13 }
 0x3c2   : > { %v792_v23 = vsub.f32 %v682_v59, %v778_v13  ;;  %v793_v27 = vsub.f32 %v684_v61, %v778_v13  ;;  %v794_v28 = vsub.f32 %v759_v3, %v778_v13  ;;  %v795_v34 = vsub.f32 %v761_v5, %v778_v13 }
 0x3c3   : > { %v804_v18 = vmul.f32 1.442695, %v788_v14  ;;  %v806_v19 = vmul.f32 1.442695, %v789_v15  ;;  %v808_v20 = vmul.f32 1.442695, %v790_v16 }
 0x3c4   : > { %v810_v21 = vmul.f32 1.442695, %v791_v17  ;;  %v787_v22 = vpop.xlane.xlu1 %786  ;;  %v812_v33 = vmul.f32 1.442695, %v792_v23  ;;  %v814_v35 = vmul.f32 1.442695, %v793_v27 }
 0x3c5   : > { %1025 = vpow2.f32 %v804_v18  ;;  %v796_v24 = vsub.f32 %v534_v49, %v787_v22  ;;  %v797_v25 = vsub.f32 %v536_v50, %v787_v22  ;;  %v798_v26 = vsub.f32 %v611_v55, %v787_v22 }
 0x3c6   : > { %1027 = vpow2.f32 %v806_v19  ;;  %v799_v32 = vsub.f32 %v613_v57, %v787_v22  ;;  %v800_v36 = vsub.f32 %v688_v63, %v787_v22  ;;  %v816_v37 = vmul.f32 1.442695, %v794_v28 }
 0x3c7   : > { %1029 = vpow2.f32 %v808_v20  ;;  %v820_v29 = vmul.f32 1.442695, %v796_v24  ;;  %v822_v30 = vmul.f32 1.442695, %v797_v25  ;;  %v824_v31 = vmul.f32 1.442695, %v798_v26 }
 0x3c8   : > { %1031 = vpow2.f32 %v810_v21  ;;  %v826_v38 = vmul.f32 1.442695, %v799_v32  ;;  %v801_v39 = vsub.f32 %v690_v1, %v787_v22  ;;  %v818_v40 = vmul.f32 1.442695, %v795_v34 }
 0x3c9   : > { %1033 = vpow2.f32 %v820_v29  ;;  %v802_v41 = vsub.f32 %v765_v7, %v787_v22  ;;  %v828_v42 = vmul.f32 1.442695, %v800_v36  ;;  %v803_v45 = vsub.f32 %v767_v10, %v787_v22 }
 0x3ca   : > { %1035 = vpow2.f32 %v822_v30  ;;  %v830_v46 = vmul.f32 1.442695, %v801_v39 }
 0x3cb   : > { %1037 = vpow2.f32 %v824_v31  ;;  %v832_v50 = vmul.f32 1.442695, %v802_v41  ;;  %v834_v54 = vmul.f32 1.442695, %v803_v45 }
 0x3cc   : > { %1039 = vpow2.f32 %v812_v33 }
 0x3cd   : > { %1041 = vpow2.f32 %v814_v35 }
 0x3ce   : > { %1043 = vpow2.f32 %v816_v37 }
 0x3cf   : > { %v1026_v43 = vpop.eup %1025  ;;  %1045 = vpow2.f32 %v826_v38 }
 0x3d0   : > { %v1028_v44 = vpop.eup %1027  ;;  %1047 = vpow2.f32 %v818_v40 }
 0x3d1   : > { %v1030_v47 = vpop.eup %1029  ;;  %v836_v48 = vadd.f32 %v1028_v44, %v1026_v43  ;;  %1049 = vpow2.f32 %v828_v42 }
 0x3d2   : > { %v1032_v49 = vpop.eup %1031  ;;  %1051 = vpow2.f32 %v830_v46 }
 0x3d3   : > { %v1034_v51 = vpop.eup %1033  ;;  %v837_v52 = vadd.f32 %v1030_v47, %v836_v48  ;;  %1053 = vpow2.f32 %v832_v50 }
 0x3d4   : > { %v1036_v53 = vpop.eup %1035  ;;  %1055 = vpow2.f32 %v834_v54 }
 0x3d5   : > { %v1038_v55 = vpop.eup %1037  ;;  %v838_v56 = vadd.f32 %v1032_v49, %v837_v52  ;;  %v845_v57 = vadd.f32 %v1036_v53, %v1034_v51 }
 0x3d6   : > { %v1040_v58 = vpop.eup %1039 }
 0x3d7   : > { %v839_v59 = vadd.f32 %v1040_v58, %v838_v56  ;;  %v846_v60 = vadd.f32 %v1038_v55, %v845_v57  ;;  %v1042_v61 = vpop.eup %1041 }
 0x3d8   : > { %v1044_v62 = vpop.eup %1043 }
 0x3d9   : > { %v840_v63 = vadd.f32 %v1042_v61, %v839_v59  ;;  %v1046_v0 = vpop.eup %1045 }
 0x3da   : > { %v1048_v1 = vpop.eup %1047  ;;  %v847_v3 = vadd.f32 %v1046_v0, %v846_v60 }
 0x3db   : > { %v841_v2 = vadd.f32 %v1044_v62, %v840_v63  ;;  %v1050_v4 = vpop.eup %1049 }
 0x3dc   : > { %v848_v6 = vadd.f32 %v1050_v4, %v847_v3  ;;  %v1052_v7 = vpop.eup %1051 }
 0x3dd   : > { %v842_v5 = vadd.f32 %v1048_v1, %v841_v2  ;;  %v1054_v9 = vpop.eup %1053 }
 0x3de   : > { %v849_v8 = vadd.f32 %v1052_v7, %v848_v6  ;;  %v1056_v11 = vpop.eup %1055 }
 0x3df   : > { %843 = vadd.xlane.f32.xlu0 %v842_v5 }
 0x3e0   : > { %v850_v10 = vadd.f32 %v1054_v9, %v849_v8 }
 0x3e2   : > { %v851_v12 = vadd.f32 %v1056_v11, %v850_v10 }
 0x3e4   : > { %852 = vadd.xlane.f32.xlu1 %v851_v12 }
 0x46c   : > { %v844_v13 = vpop.xlane.xlu0 %843 }
 0x46d   : > { %1057 = vrcp.f32 %v844_v13 }
 0x471   : > { %v853_v14 = vpop.xlane.xlu1 %852 }
 0x472   : > { %1059 = vrcp.f32 %v853_v14 }
 0x477   : > { %v1058_v15 = vpop.eup %1057 }
 0x478   : > { %v856_v16 = vmul.f32 %v1058_v15, %v1026_v43  ;;  %v857_v17 = vmul.f32 %v1058_v15, %v1028_v44  ;;  %v858_v18 = vmul.f32 %v1058_v15, %v1030_v47  ;;  %v859_v19 = vmul.f32 %v1058_v15, %v1032_v49 }
 0x479   : > { %v860_v20 = vmul.f32 %v1058_v15, %v1040_v58  ;;  %v861_v21 = vmul.f32 %v1058_v15, %v1042_v61  ;;  %v862_v22 = vmul.f32 %v1058_v15, %v1044_v62  ;;  %v863_v23 = vmul.f32 %v1058_v15, %v1048_v1 }
 0x47a   : > { %872 = vst [vmem:[%s1139_s14] sm:$0xff] %v856_v16  ;;  %873 = vst [vmem:[%s1139_s14 + $0x8] sm:$0xff] %v857_v17 }
 0x47b   : > { %874 = vst [vmem:[%s1139_s14 + $0x10] sm:$0xff] %v858_v18  ;;  %875 = vst [vmem:[%s1139_s14 + $0x18] sm:$0xff] %v859_v19 }
 0x47c   : > { %876 = vst [vmem:[%s1139_s14 + $0x20] sm:$0xff] %v860_v20  ;;  %877 = vst [vmem:[%s1139_s14 + $0x28] sm:$0xff] %v861_v21  ;;  %v1060_v24 = vpop.eup %1059 }
 0x47d   : > { %878 = vst [vmem:[%s1139_s14 + $0x30] sm:$0xff] %v862_v22  ;;  %879 = vst [vmem:[%s1139_s14 + $0x38] sm:$0xff] %v863_v23  ;;  %v864_v25 = vmul.f32 %v1060_v24, %v1034_v51  ;;  %v865_v26 = vmul.f32 %v1060_v24, %v1036_v53  ;;  %v866_v27 = vmul.f32 %v1060_v24, %v1038_v55 }
 0x47e   : > { %v867_v28 = vmul.f32 %v1060_v24, %v1046_v0  ;;  %v868_v29 = vmul.f32 %v1060_v24, %v1050_v4  ;;  %v869_v30 = vmul.f32 %v1060_v24, %v1052_v7  ;;  %v870_v31 = vmul.f32 %v1060_v24, %v1054_v9 }
 0x47f   : > { %v871_v32 = vmul.f32 %v1060_v24, %v1056_v11  ;;  %880 = vst [vmem:[%s1139_s14 + $0x40] sm:$0xff] %v864_v25  ;;  %881 = vst [vmem:[%s1139_s14 + $0x48] sm:$0xff] %v865_v26 }
 0x480   : > { %882 = vst [vmem:[%s1139_s14 + $0x50] sm:$0xff] %v866_v27  ;;  %883 = vst [vmem:[%s1139_s14 + $0x58] sm:$0xff] %v867_v28 }
 0x481   : > { %884 = vst [vmem:[%s1139_s14 + $0x60] sm:$0xff] %v868_v29  ;;  %885 = vst [vmem:[%s1139_s14 + $0x68] sm:$0xff] %v869_v30 }
 0x482   : > { %886 = vst [vmem:[%s1139_s14 + $0x70] sm:$0xff] %v870_v31  ;;  %887 = vst [vmem:[%s1139_s14 + $0x78] sm:$0xff] %v871_v32 }
 0x483 PF: > { %s11_s6 = sadd.s32 1, %s1067_s6  }
 0x484   : > { %p8_p4 = scmp.ge.s32.totalorder %s11_s6, 4  }
 0x486   :  { %10 = sbr.rel (!%p8_p4) target bundleno = 1 (0x1), region = 54 }

</bundles_post_ra>
